<compile_context>
chip_gen: v5e
topology: v5e:2x2
jax: 0.10.0
libtpu: 0.0.40
codegen_flags: <defaults>
</compile_context>

<pallas_src>
import math

import jax
import jax.numpy as jnp
from jax import lax
from jax.experimental import pallas as pl
from jax.experimental.pallas import tpu as pltpu


# ---------------------------------------------------------------------------
# Kernels
# ---------------------------------------------------------------------------

def _rbf_novar_kernel(x_ref, s_ref, c_ref, a_ref, w_ref, o_ref):
    # x_ref : [TB, Q]     input means
    # s_ref : [Q, TDQ]    0/1 selector, S[q, j] = (j % Q == q)
    # c_ref : [K, TDQ]    centers          (lane j = local_d * Q + q)
    # a_ref : [K, TDQ]    -0.5 / ls^2      (precomputed in wrapper)
    # w_ref : [K, TDQ]    weights
    # o_ref : [TB, TDQ]
    f32 = jnp.float32
    x = x_ref[...].astype(f32)
    if x_ref.shape[1] == o_ref.shape[1]:
        xb = x                                    # TD == 1: layouts already match
    else:
        # Lane-dense broadcast across the D tile via the (idle) MXU.
        xb = jnp.dot(x, s_ref[...], preferred_element_type=f32)

    K = c_ref.shape[0]

    def body(k, acc):
        c = c_ref[pl.ds(k, 1), :]                 # [1, TDQ]
        a = a_ref[pl.ds(k, 1), :]
        w = w_ref[pl.ds(k, 1), :]
        d = xb - c
        return acc + w * jnp.exp((d * d) * a)     # one EUP op (exp) per element

    acc = lax.fori_loop(0, K, body, jnp.zeros_like(xb), unroll=(K <= 32))
    o_ref[...] = acc.astype(o_ref.dtype)


def _rbf_var_kernel(x_ref, v_ref, s_ref, c_ref, ls2_ref, wls_ref, o_ref):
    # x_ref, v_ref : [TB, Q]
    # s_ref        : [Q, TDQ]
    # c_ref, ls2_ref, wls_ref : [K, TDQ]   (wls = weight * ls)
    # o_ref        : [TB, TDQ]
    f32 = jnp.float32
    x = x_ref[...].astype(f32)
    v = v_ref[...].astype(f32)
    if x_ref.shape[1] == o_ref.shape[1]:
        xb, vb = x, v
    else:
        s = s_ref[...]
        xb = jnp.dot(x, s, preferred_element_type=f32)
        vb = jnp.dot(v, s, preferred_element_type=f32)

    K = c_ref.shape[0]

    def body(k, acc):
        c = c_ref[pl.ds(k, 1), :]
        ls2 = ls2_ref[pl.ds(k, 1), :]
        wls = wls_ref[pl.ds(k, 1), :]
        # sqrt(ls^2/denom)*w == (w*ls)*rsqrt(denom) since ls > 0 (softplus + 1e-6).
        r = lax.rsqrt(ls2 + vb)                   # EUP (1/2)
        t = (xb - c) * r                          # dist^2/denom == t^2
        return acc + (wls * r) * jnp.exp(-0.5 * (t * t))   # EUP (2/2)

    acc = lax.fori_loop(0, K, body, jnp.zeros_like(xb), unroll=(K <= 32))
    o_ref[...] = acc.astype(o_ref.dtype)


# ---------------------------------------------------------------------------
# Tiling / VMEM budget
# ---------------------------------------------------------------------------

def _vmem_limit_bytes():
    # Generation aware: v7x has 64 MiB physical VMEM vs 128 MiB on v5e/v6e.
    try:
        cap = pltpu.get_tpu_info().vmem_capacity_bytes
    except Exception:
        cap = 64 * 1024 * 1024                    # conservative fallback
    return int(min(max(cap // 2, 16 * 1024 * 1024), 64 * 1024 * 1024))


def _pick_tiles(B, D, Q, out_itemsize, vmem_limit):
    # TD: the block lane width TD*Q must be a multiple of 128, or TD == D
    # (block last dim equal to the full array dim is always legal).
    unit = 128 // math.gcd(Q, 128)
    if unit >= D:
        TD = D
    else:
        TD = unit * max(1, min(1024 // (unit * Q), D // unit))
    TDQ = TD * Q

    # ~12 block-sized f32 arrays live at once (compute temps + the pipelined
    # input/output buffers); keep them within about half the scoped budget.
    per_temp = max(vmem_limit // 24, 128 * 1024)
    TB = per_temp // (4 * max(TDQ, 1))
    TB = min(TB, 1024)
    align = 16 if out_itemsize < 4 else 8
    if TB >= B:
        TB = B
    else:
        TB = max(align, (TB // align) * align)
    return TB, TD


# ---------------------------------------------------------------------------
# Wrapper
# ---------------------------------------------------------------------------

def gaussian_rbf(x_mean, weight, center, ls_raw, x_var=None, *,
                 tile_b=None, tile_d=None):
    """x_mean: [B, 1, Q], optional x_var: [B, 1, Q] -> [B, D, Q]."""
    B, one, Q = x_mean.shape
    D, Q2, K = weight.shape
    assert one == 1 and Q2 == Q

    out_dtype = x_mean.dtype
    f32 = jnp.float32

    vmem_limit = _vmem_limit_bytes()
    TB, TD = _pick_tiles(B, D, Q, jnp.dtype(out_dtype).itemsize, vmem_limit)
    if tile_d is not None:
        TD = min(int(tile_d), D)
        assert TD == D or (TD * Q) % 128 == 0, \
            "tile_d must make TD*Q a multiple of 128 (or TD == D)"
    if tile_b is not None:
        align = 16 if jnp.dtype(out_dtype).itemsize < 4 else 8
        TB = B if tile_b >= B else max(align, (int(tile_b) // align) * align)
    TDQ = TD * Q

    # One-time parameter prep (hoisted out of the hot path), relayout to
    # [K, D*Q] so the flattened (d, q) index is the 128-lane axis in-kernel.
    def to_k_dq(p):
        return jnp.transpose(p.astype(f32), (2, 0, 1)).reshape(K, D * Q)

    ls = jax.nn.softplus(ls_raw.astype(f32)) + 1e-6
    c_f = to_k_dq(center)
    x2 = x_mean.reshape(B, Q)

    # Selector for the in-kernel lane broadcast across the D tile:
    #   xb[b, d*Q + q] = x[b, q]  ==  x @ S,  S[q, j] = (j % Q == q).
    sel = jnp.tile(jnp.eye(Q, dtype=f32), (1, TD))

    # B innermost -> parameter blocks keep the same index across consecutive
    # steps and are not re-fetched from HBM.
    grid = (pl.cdiv(D, TD), pl.cdiv(B, TB))

    x_spec = pl.BlockSpec((TB, Q), lambda d, b: (b, 0))
    s_spec = pl.BlockSpec((Q, TDQ), lambda d, b: (0, 0))
    p_spec = pl.BlockSpec((K, TDQ), lambda d, b: (0, d))
    o_spec = pl.BlockSpec((TB, TDQ), lambda d, b: (b, d))

    cparams = pltpu.CompilerParams(
        dimension_semantics=("parallel", "parallel"),
        vmem_limit_bytes=vmem_limit,
    )
    out_shape = jax.ShapeDtypeStruct((B, D * Q), out_dtype)

    if x_var is None:
        a_f = to_k_dq(-0.5 / (ls * ls))           # fold -0.5 into the scale
        w_f = to_k_dq(weight)
        out = pl.pallas_call(
            _rbf_novar_kernel,
            out_shape=out_shape,
            grid=grid,
            in_specs=[x_spec, s_spec, p_spec, p_spec, p_spec],
            out_specs=o_spec,
            compiler_params=cparams,
        )(x2, sel, c_f, a_f, w_f)
    else:
        v2 = x_var.reshape(B, Q)
        ls2_f = to_k_dq(ls * ls)
        wls_f = to_k_dq(weight.astype(f32) * ls)
        out = pl.pallas_call(
            _rbf_var_kernel,
            out_shape=out_shape,
            grid=grid,
            in_specs=[x_spec, x_spec, s_spec, p_spec, p_spec, p_spec],
            out_specs=o_spec,
            compiler_params=cparams,
        )(x2, v2, sel, c_f, ls2_f, wls_f)

    return out.reshape(B, D, Q)


# ---------------------------------------------------------------------------
# Pure-JAX reference (mirrors the PyTorch forward exactly)
# ---------------------------------------------------------------------------

def gaussian_rbf_reference(x_mean, weight, center, ls_raw, x_var=None):
    ls = jax.nn.softplus(ls_raw) + 1e-6
    dist = x_mean[..., None] - center             # [B, D, Q, K]
    var = 0.0 if x_var is None else x_var[..., None]
    denom = ls * ls + var
    e = jnp.sqrt(ls * ls / denom) * jnp.exp(-0.5 * dist * dist / denom)
    return (e * weight).sum(-1)


# ---------------------------------------------------------------------------
# Test
# ---------------------------------------------------------------------------

if __name__ == "__main__":
    key = jax.random.PRNGKey(0)

    def make_inputs(B, D, Q, K):
        ks = jax.random.split(key, 5)
        weight = 0.1 * jax.random.normal(ks[0], (D, Q, K), jnp.float32)
        center = jax.random.uniform(ks[1], (D, Q, K), jnp.float32, -1.0, 1.0)
        ls_raw = 0.1 * jax.random.normal(ks[2], (D, Q, K), jnp.float32)
        x_mean = jax.random.normal(ks[3], (B, 1, Q), jnp.float32)
        x_var = jax.nn.softplus(jax.random.normal(ks[4], (B, 1, Q), jnp.float32))
        return weight, center, ls_raw, x_mean, x_var

    def check(B, D, Q, K, **tile_kw):
        weight, center, ls_raw, x_mean, x_var = make_inputs(B, D, Q, K)
        out = jax.block_until_ready(
            gaussian_rbf(x_mean, weight, center, ls_raw, x_var, **tile_kw))
        ref = gaussian_rbf_reference(x_mean, weight, center, ls_raw, x_var)
        assert out.shape == (B, D, Q)
        assert jnp.allclose(out, ref, rtol=1e-5, atol=1e-5), (B, D, Q, K, "var")
        out0 = jax.block_until_ready(
            gaussian_rbf(x_mean, weight, center, ls_raw, None, **tile_kw))
        ref0 = gaussian_rbf_reference(x_mean, weight, center, ls_raw, None)
        assert jnp.allclose(out0, ref0, rtol=1e-5, atol=1e-5), (B, D, Q, K, "novar")

    # 1) Tiny single-block case (full-dim blocks), var and no-var.
    check(2, 4, 8, 8)

    # 2) Multi-block grid with partial edge tiles on BOTH axes
    #    (B=40 / TB=16 -> 3 B-blocks; D=24 / TD=16 -> 2 D-blocks, last partial).
    check(40, 24, 8, 8, tile_b=16)

    # 3) Several D and B blocks: parameters stay VMEM-resident across the inner
    #    B axis; lane-dense 128-wide output blocks.
    check(64, 32, 8, 4, tile_b=32, tile_d=16)

    # 4) bf16 inputs: kernel writes bf16 output directly (no wrapper cast pass).
    weight, center, ls_raw, x_mean, x_var = make_inputs(16, 16, 8, 8)
    xb16 = x_mean.astype(jnp.bfloat16)
    vb16 = x_var.astype(jnp.bfloat16)
    out_b = jax.block_until_ready(gaussian_rbf(xb16, weight, center, ls_raw, vb16))
    assert out_b.dtype == jnp.bfloat16 and out_b.shape == (16, 16, 8)
    ref_b = gaussian_rbf_reference(xb16.astype(jnp.float32), weight, center,
                                   ls_raw, vb16.astype(jnp.float32))
    assert jnp.allclose(out_b.astype(jnp.float32), ref_b, rtol=5e-2, atol=3e-2)

    print("KERNEL_OK")
</pallas_src>

<mosaic_0001>
module attributes {stable_mosaic.version = 11 : i64} {
  func.func @_rbf_var_kernel(%arg0: i32, %arg1: i32, %arg2: memref<2x8xf32, #tpu.memory_space<vmem>>, %arg3: memref<2x8xf32, #tpu.memory_space<vmem>>, %arg4: memref<8x32xf32, #tpu.memory_space<vmem>>, %arg5: memref<8x32xf32, #tpu.memory_space<vmem>>, %arg6: memref<8x32xf32, #tpu.memory_space<vmem>>, %arg7: memref<8x32xf32, #tpu.memory_space<vmem>>, %arg8: memref<2x32xf32, #tpu.memory_space<vmem>>) attributes {dimension_semantics = [#tpu.dimension_semantics<parallel>, #tpu.dimension_semantics<parallel>], iteration_bounds = array<i64: 1, 1>, scalar_prefetch = 0 : i64, scratch_operands = 0 : i64, tpu.core_type = #tpu.core_type<tc>, window_params = [{transform_indices = @transform_0, window_bounds = array<i64: 2, 8>}, {transform_indices = @transform_1, window_bounds = array<i64: 2, 8>}, {pipeline_mode = #tpu.pipeline_mode<synchronous>, transform_indices = @transform_2, window_bounds = array<i64: 8, 32>}, {transform_indices = @transform_3, window_bounds = array<i64: 8, 32>}, {transform_indices = @transform_4, window_bounds = array<i64: 8, 32>}, {transform_indices = @transform_5, window_bounds = array<i64: 8, 32>}, {transform_indices = @transform_6, window_bounds = array<i64: 2, 32>}]} {
    %c0 = arith.constant 0 : index
    %c0_0 = arith.constant 0 : index
    %0 = vector.load %arg2[%c0, %c0_0] : memref<2x8xf32, #tpu.memory_space<vmem>>, vector<2x8xf32>
    %c0_1 = arith.constant 0 : index
    %c0_2 = arith.constant 0 : index
    %1 = vector.load %arg3[%c0_1, %c0_2] : memref<2x8xf32, #tpu.memory_space<vmem>>, vector<2x8xf32>
    %c0_3 = arith.constant 0 : index
    %c0_4 = arith.constant 0 : index
    %2 = vector.load %arg4[%c0_3, %c0_4] : memref<8x32xf32, #tpu.memory_space<vmem>>, vector<8x32xf32>
    %cst = arith.constant dense<0.000000e+00> : vector<2x32xf32>
    %3 = tpu.matmul %0, %2, %cst {dimension_numbers = #tpu.dot_dimension_numbers<[1], [0], [0], [1], [0, 0, 1, 1], [], []>} : vector<2x8xf32>, vector<8x32xf32>, vector<2x32xf32> -> vector<2x32xf32>
    %cst_5 = arith.constant dense<0.000000e+00> : vector<2x32xf32>
    %4 = tpu.matmul %1, %2, %cst_5 {dimension_numbers = #tpu.dot_dimension_numbers<[1], [0], [0], [1], [0, 0, 1, 1], [], []>} : vector<2x8xf32>, vector<8x32xf32>, vector<2x32xf32> -> vector<2x32xf32>
    %cst_6 = arith.constant 0.000000e+00 : f32
    %5 = vector.broadcast %cst_6 : f32 to vector<2x32xf32>
    %c0_i32 = arith.constant 0 : i32
    %6 = arith.index_cast %c0_i32 : i32 to index
    %c0_7 = arith.constant 0 : index
    %7 = vector.load %arg5[%6, %c0_7] : memref<8x32xf32, #tpu.memory_space<vmem>>, vector<1x32xf32>
    %8 = arith.index_cast %c0_i32 : i32 to index
    %c0_8 = arith.constant 0 : index
    %9 = vector.load %arg6[%8, %c0_8] : memref<8x32xf32, #tpu.memory_space<vmem>>, vector<1x32xf32>
    %10 = arith.index_cast %c0_i32 : i32 to index
    %c0_9 = arith.constant 0 : index
    %11 = vector.load %arg7[%10, %c0_9] : memref<8x32xf32, #tpu.memory_space<vmem>>, vector<1x32xf32>
    %12 = vector.broadcast %9 : vector<1x32xf32> to vector<2x32xf32>
    %13 = arith.addf %12, %4 : vector<2x32xf32>
    %14 = math.rsqrt %13 : vector<2x32xf32>
    %15 = vector.broadcast %7 : vector<1x32xf32> to vector<2x32xf32>
    %16 = arith.subf %3, %15 : vector<2x32xf32>
    %17 = arith.mulf %16, %14 : vector<2x32xf32>
    %18 = vector.broadcast %11 : vector<1x32xf32> to vector<2x32xf32>
    %19 = arith.mulf %18, %14 : vector<2x32xf32>
    %20 = arith.mulf %17, %17 : vector<2x32xf32>
    %cst_10 = arith.constant -5.000000e-01 : f32
    %21 = vector.broadcast %cst_10 : f32 to vector<2x32xf32>
    %22 = arith.mulf %21, %20 : vector<2x32xf32>
    %23 = math.exp %22 : vector<2x32xf32>
    %24 = arith.mulf %19, %23 : vector<2x32xf32>
    %25 = arith.addf %5, %24 : vector<2x32xf32>
    %c1_i32 = arith.constant 1 : i32
    %26 = arith.index_cast %c1_i32 : i32 to index
    %c0_11 = arith.constant 0 : index
    %27 = vector.load %arg5[%26, %c0_11] : memref<8x32xf32, #tpu.memory_space<vmem>>, vector<1x32xf32>
    %28 = arith.index_cast %c1_i32 : i32 to index
    %c0_12 = arith.constant 0 : index
    %29 = vector.load %arg6[%28, %c0_12] : memref<8x32xf32, #tpu.memory_space<vmem>>, vector<1x32xf32>
    %30 = arith.index_cast %c1_i32 : i32 to index
    %c0_13 = arith.constant 0 : index
    %31 = vector.load %arg7[%30, %c0_13] : memref<8x32xf32, #tpu.memory_space<vmem>>, vector<1x32xf32>
    %32 = vector.broadcast %29 : vector<1x32xf32> to vector<2x32xf32>
    %33 = arith.addf %32, %4 : vector<2x32xf32>
    %34 = math.rsqrt %33 : vector<2x32xf32>
    %35 = vector.broadcast %27 : vector<1x32xf32> to vector<2x32xf32>
    %36 = arith.subf %3, %35 : vector<2x32xf32>
    %37 = arith.mulf %36, %34 : vector<2x32xf32>
    %38 = vector.broadcast %31 : vector<1x32xf32> to vector<2x32xf32>
    %39 = arith.mulf %38, %34 : vector<2x32xf32>
    %40 = arith.mulf %37, %37 : vector<2x32xf32>
    %cst_14 = arith.constant -5.000000e-01 : f32
    %41 = vector.broadcast %cst_14 : f32 to vector<2x32xf32>
    %42 = arith.mulf %41, %40 : vector<2x32xf32>
    %43 = math.exp %42 : vector<2x32xf32>
    %44 = arith.mulf %39, %43 : vector<2x32xf32>
    %45 = arith.addf %25, %44 : vector<2x32xf32>
    %c2_i32 = arith.constant 2 : i32
    %46 = arith.index_cast %c2_i32 : i32 to index
    %c0_15 = arith.constant 0 : index
    %47 = vector.load %arg5[%46, %c0_15] : memref<8x32xf32, #tpu.memory_space<vmem>>, vector<1x32xf32>
    %48 = arith.index_cast %c2_i32 : i32 to index
    %c0_16 = arith.constant 0 : index
    %49 = vector.load %arg6[%48, %c0_16] : memref<8x32xf32, #tpu.memory_space<vmem>>, vector<1x32xf32>
    %50 = arith.index_cast %c2_i32 : i32 to index
    %c0_17 = arith.constant 0 : index
    %51 = vector.load %arg7[%50, %c0_17] : memref<8x32xf32, #tpu.memory_space<vmem>>, vector<1x32xf32>
    %52 = vector.broadcast %49 : vector<1x32xf32> to vector<2x32xf32>
    %53 = arith.addf %52, %4 : vector<2x32xf32>
    %54 = math.rsqrt %53 : vector<2x32xf32>
    %55 = vector.broadcast %47 : vector<1x32xf32> to vector<2x32xf32>
    %56 = arith.subf %3, %55 : vector<2x32xf32>
    %57 = arith.mulf %56, %54 : vector<2x32xf32>
    %58 = vector.broadcast %51 : vector<1x32xf32> to vector<2x32xf32>
    %59 = arith.mulf %58, %54 : vector<2x32xf32>
    %60 = arith.mulf %57, %57 : vector<2x32xf32>
    %cst_18 = arith.constant -5.000000e-01 : f32
    %61 = vector.broadcast %cst_18 : f32 to vector<2x32xf32>
    %62 = arith.mulf %61, %60 : vector<2x32xf32>
    %63 = math.exp %62 : vector<2x32xf32>
    %64 = arith.mulf %59, %63 : vector<2x32xf32>
    %65 = arith.addf %45, %64 : vector<2x32xf32>
    %c3_i32 = arith.constant 3 : i32
    %66 = arith.index_cast %c3_i32 : i32 to index
    %c0_19 = arith.constant 0 : index
    %67 = vector.load %arg5[%66, %c0_19] : memref<8x32xf32, #tpu.memory_space<vmem>>, vector<1x32xf32>
    %68 = arith.index_cast %c3_i32 : i32 to index
    %c0_20 = arith.constant 0 : index
    %69 = vector.load %arg6[%68, %c0_20] : memref<8x32xf32, #tpu.memory_space<vmem>>, vector<1x32xf32>
    %70 = arith.index_cast %c3_i32 : i32 to index
    %c0_21 = arith.constant 0 : index
    %71 = vector.load %arg7[%70, %c0_21] : memref<8x32xf32, #tpu.memory_space<vmem>>, vector<1x32xf32>
    %72 = vector.broadcast %69 : vector<1x32xf32> to vector<2x32xf32>
    %73 = arith.addf %72, %4 : vector<2x32xf32>
    %74 = math.rsqrt %73 : vector<2x32xf32>
    %75 = vector.broadcast %67 : vector<1x32xf32> to vector<2x32xf32>
    %76 = arith.subf %3, %75 : vector<2x32xf32>
    %77 = arith.mulf %76, %74 : vector<2x32xf32>
    %78 = vector.broadcast %71 : vector<1x32xf32> to vector<2x32xf32>
    %79 = arith.mulf %78, %74 : vector<2x32xf32>
    %80 = arith.mulf %77, %77 : vector<2x32xf32>
    %cst_22 = arith.constant -5.000000e-01 : f32
    %81 = vector.broadcast %cst_22 : f32 to vector<2x32xf32>
    %82 = arith.mulf %81, %80 : vector<2x32xf32>
    %83 = math.exp %82 : vector<2x32xf32>
    %84 = arith.mulf %79, %83 : vector<2x32xf32>
    %85 = arith.addf %65, %84 : vector<2x32xf32>
    %c4_i32 = arith.constant 4 : i32
    %86 = arith.index_cast %c4_i32 : i32 to index
    %c0_23 = arith.constant 0 : index
    %87 = vector.load %arg5[%86, %c0_23] : memref<8x32xf32, #tpu.memory_space<vmem>>, vector<1x32xf32>
    %88 = arith.index_cast %c4_i32 : i32 to index
    %c0_24 = arith.constant 0 : index
    %89 = vector.load %arg6[%88, %c0_24] : memref<8x32xf32, #tpu.memory_space<vmem>>, vector<1x32xf32>
    %90 = arith.index_cast %c4_i32 : i32 to index
    %c0_25 = arith.constant 0 : index
    %91 = vector.load %arg7[%90, %c0_25] : memref<8x32xf32, #tpu.memory_space<vmem>>, vector<1x32xf32>
    %92 = vector.broadcast %89 : vector<1x32xf32> to vector<2x32xf32>
    %93 = arith.addf %92, %4 : vector<2x32xf32>
    %94 = math.rsqrt %93 : vector<2x32xf32>
    %95 = vector.broadcast %87 : vector<1x32xf32> to vector<2x32xf32>
    %96 = arith.subf %3, %95 : vector<2x32xf32>
    %97 = arith.mulf %96, %94 : vector<2x32xf32>
    %98 = vector.broadcast %91 : vector<1x32xf32> to vector<2x32xf32>
    %99 = arith.mulf %98, %94 : vector<2x32xf32>
    %100 = arith.mulf %97, %97 : vector<2x32xf32>
    %cst_26 = arith.constant -5.000000e-01 : f32
    %101 = vector.broadcast %cst_26 : f32 to vector<2x32xf32>
    %102 = arith.mulf %101, %100 : vector<2x32xf32>
    %103 = math.exp %102 : vector<2x32xf32>
    %104 = arith.mulf %99, %103 : vector<2x32xf32>
    %105 = arith.addf %85, %104 : vector<2x32xf32>
    %c5_i32 = arith.constant 5 : i32
    %106 = arith.index_cast %c5_i32 : i32 to index
    %c0_27 = arith.constant 0 : index
    %107 = vector.load %arg5[%106, %c0_27] : memref<8x32xf32, #tpu.memory_space<vmem>>, vector<1x32xf32>
    %108 = arith.index_cast %c5_i32 : i32 to index
    %c0_28 = arith.constant 0 : index
    %109 = vector.load %arg6[%108, %c0_28] : memref<8x32xf32, #tpu.memory_space<vmem>>, vector<1x32xf32>
    %110 = arith.index_cast %c5_i32 : i32 to index
    %c0_29 = arith.constant 0 : index
    %111 = vector.load %arg7[%110, %c0_29] : memref<8x32xf32, #tpu.memory_space<vmem>>, vector<1x32xf32>
    %112 = vector.broadcast %109 : vector<1x32xf32> to vector<2x32xf32>
    %113 = arith.addf %112, %4 : vector<2x32xf32>
    %114 = math.rsqrt %113 : vector<2x32xf32>
    %115 = vector.broadcast %107 : vector<1x32xf32> to vector<2x32xf32>
    %116 = arith.subf %3, %115 : vector<2x32xf32>
    %117 = arith.mulf %116, %114 : vector<2x32xf32>
    %118 = vector.broadcast %111 : vector<1x32xf32> to vector<2x32xf32>
    %119 = arith.mulf %118, %114 : vector<2x32xf32>
    %120 = arith.mulf %117, %117 : vector<2x32xf32>
    %cst_30 = arith.constant -5.000000e-01 : f32
    %121 = vector.broadcast %cst_30 : f32 to vector<2x32xf32>
    %122 = arith.mulf %121, %120 : vector<2x32xf32>
    %123 = math.exp %122 : vector<2x32xf32>
    %124 = arith.mulf %119, %123 : vector<2x32xf32>
    %125 = arith.addf %105, %124 : vector<2x32xf32>
    %c6_i32 = arith.constant 6 : i32
    %126 = arith.index_cast %c6_i32 : i32 to index
    %c0_31 = arith.constant 0 : index
    %127 = vector.load %arg5[%126, %c0_31] : memref<8x32xf32, #tpu.memory_space<vmem>>, vector<1x32xf32>
    %128 = arith.index_cast %c6_i32 : i32 to index
    %c0_32 = arith.constant 0 : index
    %129 = vector.load %arg6[%128, %c0_32] : memref<8x32xf32, #tpu.memory_space<vmem>>, vector<1x32xf32>
    %130 = arith.index_cast %c6_i32 : i32 to index
    %c0_33 = arith.constant 0 : index
    %131 = vector.load %arg7[%130, %c0_33] : memref<8x32xf32, #tpu.memory_space<vmem>>, vector<1x32xf32>
    %132 = vector.broadcast %129 : vector<1x32xf32> to vector<2x32xf32>
    %133 = arith.addf %132, %4 : vector<2x32xf32>
    %134 = math.rsqrt %133 : vector<2x32xf32>
    %135 = vector.broadcast %127 : vector<1x32xf32> to vector<2x32xf32>
    %136 = arith.subf %3, %135 : vector<2x32xf32>
    %137 = arith.mulf %136, %134 : vector<2x32xf32>
    %138 = vector.broadcast %131 : vector<1x32xf32> to vector<2x32xf32>
    %139 = arith.mulf %138, %134 : vector<2x32xf32>
    %140 = arith.mulf %137, %137 : vector<2x32xf32>
    %cst_34 = arith.constant -5.000000e-01 : f32
    %141 = vector.broadcast %cst_34 : f32 to vector<2x32xf32>
    %142 = arith.mulf %141, %140 : vector<2x32xf32>
    %143 = math.exp %142 : vector<2x32xf32>
    %144 = arith.mulf %139, %143 : vector<2x32xf32>
    %145 = arith.addf %125, %144 : vector<2x32xf32>
    %c7_i32 = arith.constant 7 : i32
    %146 = arith.index_cast %c7_i32 : i32 to index
    %c0_35 = arith.constant 0 : index
    %147 = vector.load %arg5[%146, %c0_35] : memref<8x32xf32, #tpu.memory_space<vmem>>, vector<1x32xf32>
    %148 = arith.index_cast %c7_i32 : i32 to index
    %c0_36 = arith.constant 0 : index
    %149 = vector.load %arg6[%148, %c0_36] : memref<8x32xf32, #tpu.memory_space<vmem>>, vector<1x32xf32>
    %150 = arith.index_cast %c7_i32 : i32 to index
    %c0_37 = arith.constant 0 : index
    %151 = vector.load %arg7[%150, %c0_37] : memref<8x32xf32, #tpu.memory_space<vmem>>, vector<1x32xf32>
    %152 = vector.broadcast %149 : vector<1x32xf32> to vector<2x32xf32>
    %153 = arith.addf %152, %4 : vector<2x32xf32>
    %154 = math.rsqrt %153 : vector<2x32xf32>
    %155 = vector.broadcast %147 : vector<1x32xf32> to vector<2x32xf32>
    %156 = arith.subf %3, %155 : vector<2x32xf32>
    %157 = arith.mulf %156, %154 : vector<2x32xf32>
    %158 = vector.broadcast %151 : vector<1x32xf32> to vector<2x32xf32>
    %159 = arith.mulf %158, %154 : vector<2x32xf32>
    %160 = arith.mulf %157, %157 : vector<2x32xf32>
    %cst_38 = arith.constant -5.000000e-01 : f32
    %161 = vector.broadcast %cst_38 : f32 to vector<2x32xf32>
    %162 = arith.mulf %161, %160 : vector<2x32xf32>
    %163 = math.exp %162 : vector<2x32xf32>
    %164 = arith.mulf %159, %163 : vector<2x32xf32>
    %165 = arith.addf %145, %164 : vector<2x32xf32>
    %c8_i32 = arith.constant 8 : i32
    %c0_39 = arith.constant 0 : index
    %c0_40 = arith.constant 0 : index
    %166 = vector.load %arg8[%c0_39, %c0_40] : memref<2x32xf32, #tpu.memory_space<vmem>>, vector<2x32xf32>
    tpu.vector_store %arg8[%c0_39, %c0_40], %165 {strides = array<i32>} : memref<2x32xf32, #tpu.memory_space<vmem>>, vector<2x32xf32>,
    return
  }
  func.func @transform_0(%arg0: i32, %arg1: i32) -> (i32, i32) {
    %c0_i32 = arith.constant 0 : i32
    %c0_i32_0 = arith.constant 0 : i32
    return %arg1, %c0_i32 : i32, i32
  }
  func.func @transform_1(%arg0: i32, %arg1: i32) -> (i32, i32) {
    %c0_i32 = arith.constant 0 : i32
    %c0_i32_0 = arith.constant 0 : i32
    return %arg1, %c0_i32 : i32, i32
  }
  func.func @transform_2(%arg0: i32, %arg1: i32) -> (i32, i32) {
    %c0_i32 = arith.constant 0 : i32
    %c0_i32_0 = arith.constant 0 : i32
    %c0_i32_1 = arith.constant 0 : i32
    return %c0_i32, %c0_i32_0 : i32, i32
  }
  func.func @transform_3(%arg0: i32, %arg1: i32) -> (i32, i32) {
    %c0_i32 = arith.constant 0 : i32
    %c0_i32_0 = arith.constant 0 : i32
    return %c0_i32, %arg0 : i32, i32
  }
  func.func @transform_4(%arg0: i32, %arg1: i32) -> (i32, i32) {
    %c0_i32 = arith.constant 0 : i32
    %c0_i32_0 = arith.constant 0 : i32
    return %c0_i32, %arg0 : i32, i32
  }
  func.func @transform_5(%arg0: i32, %arg1: i32) -> (i32, i32) {
    %c0_i32 = arith.constant 0 : i32
    %c0_i32_0 = arith.constant 0 : i32
    return %c0_i32, %arg0 : i32, i32
  }
  func.func @transform_6(%arg0: i32, %arg1: i32) -> (i32, i32) {
    %c0_i32 = arith.constant 0 : i32
    return %arg1, %arg0 : i32, i32
  }
}

</mosaic_0001>

<bundles_post_ra>
// kernel: tpu_custom_call.1
= control target key start
LH: loop header
LB: loop body
LE: loop exit
PB: predicated region body
PF: predicated region fallthrough
CT: control target
= control target key end

     0   :  { %11 = vsyncpa [#allocation3], 0  ;;  %s843_s0 = inlined_call_operand.hbm [shape: f32[2,8], index: 0, kind: input, shape index: {}]   ;;  %s844_s1 = inlined_call_operand.hbm [shape: f32[2,8], index: 1, kind: input, shape index: {}]   ;;  %s845_s2 = inlined_call_operand.hbm [shape: f32[8,32], index: 2, kind: input, shape index: {}]   ;;  %s846_s3 = inlined_call_operand.hbm [shape: f32[8,32], index: 3, kind: input, shape index: {}]   ;;  %s847_s4 = inlined_call_operand.hbm [shape: f32[8,32], index: 4, kind: input, shape index: {}]   ;;  %s848_s5 = inlined_call_operand.hbm [shape: f32[8,32], index: 5, kind: input, shape index: {}]   ;;  %s849_s6 = inlined_call_operand.hbm [shape: f32[2,32], index: 6, kind: output, shape index: {}]  }
   0x1   :  { %12 = vsyncpa [#allocation6], 0 }
   0x2   :  { %13 = vsyncpa [#allocation9], 0 }
   0x3   :  { %14 = vsyncpa [#allocation12], 0  ;;  %s32_s23 = sshll.u32 %s844_s1, 4  ;;  %s33_s23 = int_to_ptr.hbm [resolvable:$true] %s32_s23 }
   0x4   :  { %15 = vsyncpa [#allocation4], 0  ;;  %s629_s24 = smov [#allocation5]   ;;  %s54_s28 = sshll.u32 %s846_s3, 4  ;;  %s55_s28 = int_to_ptr.hbm [resolvable:$true] %s54_s28 }
   0x5   :  { %s34_s25 = sshll.u32 %s629_s24, 4  ;;  %s630_s29 = smov [#allocation8]   ;;  %s35_s25 = int_to_ptr.vmem [resolvable:$true] %s34_s25 }
   0x6   :  { %37 = dma.hbm_to_vmem [thread:$0]  %s33_s23, 32, %s35_s25, [#allocation6]  }
   0x7   :  { %s56_s30 = sshll.u32 %s630_s29, 4  ;;  %s21_s9 = sshll.u32 %s843_s0, 4  ;;  %s57_s30 = int_to_ptr.vmem [resolvable:$true] %s56_s30  ;;  %s22_s9 = int_to_ptr.hbm [resolvable:$true] %s21_s9 }
   0x8   :  { %59 = dma.hbm_to_vmem [thread:$0]  %s55_s28, 128, %s57_s30, [#allocation9]  }
   0x9   :  { %s43_s11 = sshll.u32 %s845_s2, 4  ;;  %s631_s12 = smov [#allocation2]   ;;  %s44_s11 = int_to_ptr.hbm [resolvable:$true] %s43_s11 }
   0xa   :  { %s23_s13 = sshll.u32 %s631_s12, 4  ;;  %s632_s3 = smov [#allocation7]   ;;  %s24_s13 = int_to_ptr.vmem [resolvable:$true] %s23_s13 }
   0xb   :  { %26 = dma.hbm_to_vmem [thread:$0]  %s22_s9, 32, %s24_s13, [#allocation3]  }
   0xc   :  { %s45_s14 = sshll.u32 %s632_s3, 4  ;;  %s65_s17 = sshll.u32 %s847_s4, 4  ;;  %s46_s14 = int_to_ptr.vmem [resolvable:$true] %s45_s14  ;;  %s66_s17 = int_to_ptr.hbm [resolvable:$true] %s65_s17 }
   0xd   :  { %48 = dma.hbm_to_vmem [thread:$0]  %s44_s11, 128, %s46_s14, [#allocation6]  }
   0xe   :  { %s76_s19 = sshll.u32 %s848_s5, 4  ;;  %s633_s20 = smov [#allocation10]   ;;  %s77_s19 = int_to_ptr.hbm [resolvable:$true] %s76_s19 }
   0xf   :  { %s67_s2 = sshll.u32 %s633_s20, 4  ;;  %s634_s21 = smov [#allocation11]   ;;  %s68_s2 = int_to_ptr.vmem [resolvable:$true] %s67_s2 }
  0x10   :  { %70 = dma.hbm_to_vmem [thread:$0]  %s66_s17, 128, %s68_s2, [#allocation9]  }
  0x11   :  { %s78_s22 = sshll.u32 %s634_s21, 4  ;;  %s79_s22 = int_to_ptr.vmem [resolvable:$true] %s78_s22 }
  0x12   :  { %81 = dma.hbm_to_vmem [thread:$0]  %s77_s19, 128, %s79_s22, [#allocation12]  }
  0x13   :  { %619 = dma.done.wait [#allocation3], 32  }
  0x14   :  { %620 = vsyncadd [#allocation3], 4294967264 }
  0x15   :  { %621 = dma.done.wait [#allocation6], 160  }
  0x16   :  { %622 = vsyncadd [#allocation6], 4294967136 }
  0x17   :  { %623 = dma.done.wait [#allocation9], 256  }
  0x18   :  { %624 = vsyncadd [#allocation9], 4294967040 }
  0x19   :  { %625 = dma.done.wait [#allocation12], 128  }
  0x1a   :  { %626 = vsyncadd [#allocation12], 4294967168  ;;  %vm109_vm0 = vcmask 64512   ;;  %v108_v0 = vld [vmem:[#allocation7] sm:$0xff]  ;;  %v107_v1 = vld [vmem:[#allocation5] sm:$0x3] }
  0x1b   :  { %v106_v2 = vld [vmem:[#allocation2] sm:$0x3]  ;;  %151 = vmatpush.msra.mxu1 %v108_v0  ;;  %128 = vmatpush.msra.mxu0 %v108_v0  ;;  %v395_v3 = vld [vmem:[#allocation10] ss:$0 sm:$0xff]  ;;  %v396_v4 = vld [vmem:[#allocation10 + $0x1] ss:$0 sm:$0xff] }
  0x1c   :  { %387 = vmatmul.msk.f32.vlgmr.msra.gmra.mxu1 %vm109_vm0, %v107_v1  ;;  %386 = vmatmul.msk.f32.vlgmr.msra.gmra.mxu0 %vm109_vm0, %v106_v2  ;;  %v397_v5 = vld [vmem:[#allocation10 + $0x2] ss:$0 sm:$0xff]  ;;  %v398_v6 = vld [vmem:[#allocation10 + $0x3] ss:$0 sm:$0xff]  ;;  %v399_v7 = vld [vmem:[#allocation10 + $0x4] ss:$0 sm:$0xff] }
  0x1d   :  { %v400_v9 = vld [vmem:[#allocation10 + $0x5] ss:$0 sm:$0xff]  ;;  %v401_v13 = vld [vmem:[#allocation10 + $0x6] ss:$0 sm:$0xff]  ;;  %v402_v18 = vld [vmem:[#allocation10 + $0x7] ss:$0 sm:$0xff] }
  0x1e   :  { %v707_v19 = vld [vmem:[#allocation8] ss:$0 sm:$0xff]  ;;  %v712_v21 = vld [vmem:[#allocation8 + $0x1] ss:$0 sm:$0xff]  ;;  %v714_v22 = vld [vmem:[#allocation8 + $0x2] ss:$0 sm:$0xff] }
  0x1f   :  { %v716_v23 = vld [vmem:[#allocation8 + $0x3] ss:$0 sm:$0xff]  ;;  %v719_v24 = vld [vmem:[#allocation8 + $0x4] ss:$0 sm:$0xff]  ;;  %v721_v25 = vld [vmem:[#allocation8 + $0x5] ss:$0 sm:$0xff] }
  0x20   :  { %v726_v28 = vld [vmem:[#allocation8 + $0x6] ss:$0 sm:$0xff]  ;;  %s635_s4 = smov [#allocation13]   ;;  %s373_s25 = sshll.u32 %s849_s6, 4  ;;  %s374_s25 = int_to_ptr.hbm [resolvable:$true] %s373_s25 }
  0x21   :  { %s371_s5 = sshll.u32 %s635_s4, 4  ;;  %s372_s5 = int_to_ptr.vmem [resolvable:$true] %s371_s5 }
  0x99   :  { %v153_v8 = vpop.f32.mrf.mxu1  ;;  %v710_v20 = vpop.f32.mrf.mxu0 }
  0x9a   :  { %v689_v10 = vadd.f32 %v395_v3, %v153_v8  ;;  %v691_v11 = vadd.f32 %v396_v4, %v153_v8  ;;  %v693_v12 = vadd.f32 %v397_v5, %v153_v8  ;;  %v695_v14 = vadd.f32 %v398_v6, %v153_v8 }
  0x9b   :  { %v698_v15 = vadd.f32 %v399_v7, %v153_v8  ;;  %v701_v16 = vadd.f32 %v400_v9, %v153_v8  ;;  %v704_v17 = vadd.f32 %v401_v13, %v153_v8  ;;  %v724_v27 = vadd.f32 %v402_v18, %v153_v8 }
  0x9c   :  { %419 = vrsqrt.f32 %v689_v10  ;;  %vm167_vm1 = vweird.f32 %v689_v10  ;;  %v172_v31 = vsub.f32 %v710_v20, %v707_v19  ;;  %vm193_vm2 = vweird.f32 %v691_v11 }
  0x9d   :  { %421 = vrsqrt.f32 %v691_v11  ;;  %v198_v34 = vsub.f32 %v710_v20, %v712_v21  ;;  %v224_v35 = vsub.f32 %v710_v20, %v714_v22  ;;  %v250_v36 = vsub.f32 %v710_v20, %v716_v23 }
  0x9e   :  { %423 = vrsqrt.f32 %v693_v12  ;;  %vm219_vm3 = vweird.f32 %v693_v12  ;;  %v276_v40 = vsub.f32 %v710_v20, %v719_v24  ;;  %v302_v41 = vsub.f32 %v710_v20, %v721_v25 }
  0x9f   :  { %425 = vrsqrt.f32 %v695_v14  ;;  %v328_v45 = vsub.f32 %v710_v20, %v726_v28  ;;  %vm245_vm4 = vweird.f32 %v695_v14  ;;  %vm271_vm6 = vweird.f32 %v698_v15 }
  0xa0   :  { %427 = vrsqrt.f32 %v698_v15  ;;  %vm297_vm8 = vweird.f32 %v701_v16 }
  0xa1   :  { %429 = vrsqrt.f32 %v701_v16 }
  0xa2   :  { %v420_v26 = vpop.eup %419  ;;  %431 = vrsqrt.f32 %v704_v17 }
  0xa3   :  { %v422_v29 = vpop.eup %421  ;;  %v162_v30 = vmul.f32 %v420_v26, %v689_v10  ;;  %433 = vrsqrt.f32 %v724_v27  ;;  %vm168_vm5 = vweird.f32 %v420_v26 }
  0xa4   :  { %v424_v32 = vpop.eup %423  ;;  %v188_v33 = vmul.f32 %v422_v29, %v691_v11  ;;  %vm194_vm7 = vweird.f32 %v422_v29  ;;  %vm169_vm10 = vmor %vm167_vm1, %vm168_vm5 }
  0xa5   :  { %v740_v37 = vpop.eup %425  ;;  %v163_v38 = vmul.f32 %v420_v26, %v162_v30  ;;  %v214_v39 = vmul.f32 %v424_v32, %v693_v12  ;;  %vm220_vm9 = vweird.f32 %v424_v32  ;;  %vm195_vm12 = vmor %vm193_vm2, %vm194_vm7  ;;  %vm349_vm7 = vweird.f32 %v724_v27 }
  0xa6   :  { %v748_v42 = vpop.eup %427  ;;  %v189_v43 = vmul.f32 %v422_v29, %v188_v33  ;;  %v240_v44 = vmul.f32 %v740_v37, %v695_v14  ;;  %vm246_vm11 = vweird.f32 %v740_v37  ;;  %vm221_vm13 = vmor %vm219_vm3, %vm220_vm9  ;;  %vm364_vm9 = vcmask 254976  }
  0xa7   :  { %v755_v46 = vpop.eup %429  ;;  %v164_v47 = vmul.f32 0.5, %v163_v38  ;;  %v215_v48 = vmul.f32 %v424_v32, %v214_v39  ;;  %v266_v49 = vmul.f32 %v748_v42, %v698_v15  ;;  %vm272_vm14 = vweird.f32 %v748_v42  ;;  %vm247_vm0 = vmor %vm245_vm4, %vm246_vm11 }
  0xa8   :  { %v760_v50 = vpop.eup %431  ;;  %v190_v51 = vmul.f32 0.5, %v189_v43  ;;  %v241_v52 = vmul.f32 %v740_v37, %v240_v44  ;;  %v292_v53 = vmul.f32 %v755_v46, %v701_v16  ;;  %vm298_vm15 = vweird.f32 %v755_v46  ;;  %vm273_vm1 = vmor %vm271_vm6, %vm272_vm14 }
  0xa9   :  { %v165_v54 = vsub.f32 1.5, %v164_v47  ;;  %v216_v55 = vmul.f32 0.5, %v215_v48  ;;  %v267_v56 = vmul.f32 %v748_v42, %v266_v49  ;;  %v318_v57 = vmul.f32 %v760_v50, %v704_v17  ;;  %v772_v1 = vpop.eup %433  ;;  %vm299_vm2 = vmor %vm297_vm8, %vm298_vm15  ;;  %v404_v48 = vld [vmem:[#allocation11] ss:$0 sm:$0xff]  ;;  %v406_v49 = vld [vmem:[#allocation11 + $0x1] ss:$0 sm:$0xff] }
  0xaa   :  { %v191_v58 = vsub.f32 1.5, %v190_v51  ;;  %v242_v59 = vmul.f32 0.5, %v241_v52  ;;  %v293_v60 = vmul.f32 %v755_v46, %v292_v53  ;;  %v344_v11 = vmul.f32 %v772_v1, %v724_v27  ;;  %v414_v52 = vld [vmem:[#allocation8 + $0x7] ss:$0 sm:$0xff] }
  0xab   :  { %v217_v61 = vsub.f32 1.5, %v216_v55  ;;  %v268_v62 = vmul.f32 0.5, %v267_v56  ;;  %v319_v63 = vmul.f32 %v760_v50, %v318_v57  ;;  %v166_v0 = vmul.f32 %v420_v26, %v165_v54  ;;  %v408_v55 = vld [vmem:[#allocation11 + $0x2] ss:$0 sm:$0xff] }
  0xac   :  { %v243_v2 = vsub.f32 1.5, %v242_v59  ;;  %v294_v3 = vmul.f32 0.5, %v293_v60  ;;  %v192_v4 = vmul.f32 %v422_v29, %v191_v58  ;;  %vm324_vm3 = vweird.f32 %v760_v50 }
  0xad   :  { %v269_v5 = vsub.f32 1.5, %v268_v62  ;;  %v170_v6 = vsel %vm169_vm10, %v420_v26, %v166_v0  ;;  %v218_v7 = vmul.f32 %v424_v32, %v217_v61  ;;  %v320_v8 = vmul.f32 0.5, %v319_v63  ;;  %v410_v62 = vld [vmem:[#allocation11 + $0x3] ss:$0 sm:$0xff] }
  0xae   :  { %v295_v9 = vsub.f32 1.5, %v294_v3  ;;  %v173_v13 = vmul.f32 %v172_v31, %v170_v6  ;;  %v196_v18 = vsel %vm195_vm12, %v422_v29, %v192_v4  ;;  %v244_v21 = vmul.f32 %v740_v37, %v243_v2  ;;  %v415_v2 = vld [vmem:[#allocation11 + $0x4] ss:$0 sm:$0xff] }
  0xaf   :  { %v199_v10 = vmul.f32 %v198_v34, %v196_v18  ;;  %v785_v19 = vsel %vm221_vm13, %v424_v32, %v218_v7  ;;  %v270_v12 = vmul.f32 %v748_v42, %v269_v5  ;;  %v321_v32 = vsub.f32 1.5, %v320_v8 }
  0xb0   :  { %v176_v22 = vmul.f32 %v173_v13, %v173_v13  ;;  %v225_v26 = vmul.f32 %v224_v35, %v785_v19  ;;  %v798_v30 = vsel %vm247_vm0, %v740_v37, %v244_v21  ;;  %v296_v31 = vmul.f32 %v755_v46, %v295_v9 }
  0xb1   :  { %v202_v29 = vmul.f32 %v199_v10, %v199_v10  ;;  %v251_v14 = vmul.f32 %v250_v36, %v798_v30  ;;  %v274_v37 = vsel %vm273_vm1, %v748_v42, %v270_v12  ;;  %v322_v38 = vmul.f32 %v760_v50, %v321_v32 }
  0xb2   :  { %v177_v33 = vmul.f32 -0.5, %v176_v22  ;;  %v228_v34 = vmul.f32 %v225_v26, %v225_v26  ;;  %v812_v15 = vsel %vm299_vm2, %v755_v46, %v296_v31  ;;  %v277_v23 = vmul.f32 %v276_v40, %v274_v37 }
  0xb3   :  { %v203_v35 = vmul.f32 -0.5, %v202_v29  ;;  %v254_v44 = vmul.f32 %v251_v14, %v251_v14  ;;  %v303_v16 = vmul.f32 %v302_v41, %v812_v15  ;;  %vm323_vm4 = vweird.f32 %v704_v17 }
  0xb4   :  { %v178_v39 = vmul.f32 1.442695, %v177_v33  ;;  %v229_v43 = vmul.f32 -0.5, %v228_v34  ;;  %v280_v47 = vmul.f32 %v277_v23, %v277_v23  ;;  %vm325_vm5 = vmor %vm323_vm4, %vm324_vm3  ;;  %v345_v51 = vmul.f32 %v772_v1, %v344_v11  ;;  %v416_v11 = vld [vmem:[#allocation11 + $0x5] ss:$0 sm:$0xff] }
  0xb5   :  { %v204_v36 = vmul.f32 1.442695, %v203_v35  ;;  %v255_v46 = vmul.f32 -0.5, %v254_v44  ;;  %v306_v24 = vmul.f32 %v303_v16, %v303_v16  ;;  %v326_v40 = vsel %vm325_vm5, %v760_v50, %v322_v38 }
  0xb6   :  { %435 = vpow2.f32 %v178_v39  ;;  %v230_v42 = vmul.f32 1.442695, %v229_v43  ;;  %v281_v41 = vmul.f32 -0.5, %v280_v47  ;;  %v329_v17 = vmul.f32 %v328_v45, %v326_v40  ;;  %v418_v39 = vld [vmem:[#allocation11 + $0x7] ss:$0 sm:$0xff] }
  0xb7   :  { %437 = vpow2.f32 %v204_v36  ;;  %v256_v25 = vmul.f32 1.442695, %v255_v46  ;;  %v307_v53 = vmul.f32 -0.5, %v306_v24  ;;  %v346_v54 = vmul.f32 0.5, %v345_v51 }
  0xb8   :  { %439 = vpow2.f32 %v230_v42  ;;  %v282_v56 = vmul.f32 1.442695, %v281_v41  ;;  %v332_v57 = vmul.f32 %v329_v17, %v329_v17  ;;  %v175_v58 = vmul.f32 %v404_v48, %v170_v6 }
  0xb9   :  { %441 = vpow2.f32 %v256_v25  ;;  %v308_v59 = vmul.f32 1.442695, %v307_v53  ;;  %v347_v60 = vsub.f32 1.5, %v346_v54  ;;  %vm350_vm6 = vweird.f32 %v772_v1 }
  0xba   :  { %v201_v61 = vmul.f32 %v406_v49, %v196_v18  ;;  %443 = vpow2.f32 %v282_v56  ;;  %v354_v63 = vsub.f32 %v710_v20, %v414_v52  ;;  %v333_v0 = vmul.f32 -0.5, %v332_v57  ;;  %vm351_vm8 = vmor %vm349_vm7, %vm350_vm6 }
  0xbb   :  { %v348_v3 = vmul.f32 %v772_v1, %v347_v60  ;;  %v227_v6 = vmul.f32 %v408_v55, %v785_v19  ;;  %445 = vpow2.f32 %v308_v59  ;;  %v253_v9 = vmul.f32 %v410_v62, %v798_v30 }
  0xbc   :  { %v436_v50 = vpop.eup %435  ;;  %v334_v7 = vmul.f32 1.442695, %v333_v0  ;;  %v279_v21 = vmul.f32 %v415_v2, %v274_v37  ;;  %v305_v33 = vmul.f32 %v416_v11, %v812_v15 }
  0xbd   :  { %v438_v28 = vpop.eup %437  ;;  %v180_v45 = vmul.f32 %v436_v50, %v175_v58  ;;  %v352_v8 = vsel %vm351_vm8, %v772_v1, %v348_v3  ;;  %v417_v1 = vld [vmem:[#allocation11 + $0x6] ss:$0 sm:$0xff] }
  0xbe   :  { %v440_v4 = vpop.eup %439  ;;  %v206_v5 = vmul.f32 %v438_v28, %v201_v61  ;;  %v355_v10 = vmul.f32 %v354_v63, %v352_v8  ;;  %447 = vpow2.f32 %v334_v7  ;;  %v331_v37 = vmul.f32 %v417_v1, %v326_v40 }
  0xbf   :  { %v442_v20 = vpop.eup %441  ;;  %v232_v18 = vmul.f32 %v440_v4, %v227_v6  ;;  %v357_v23 = vmul.f32 %v418_v39, %v352_v8 }
  0xc0   :  { %v207_v13 = vadd.f32 %v206_v5, %v180_v45  ;;  %v444_v27 = vpop.eup %443  ;;  %v258_v26 = vmul.f32 %v442_v20, %v253_v9  ;;  %v358_v19 = vmul.f32 %v355_v10, %v355_v10 }
  0xc1   :  { %v446_v12 = vpop.eup %445  ;;  %v284_v31 = vmul.f32 %v444_v27, %v279_v21 }
  0xc2   :  { %v233_v22 = vadd.f32 %v232_v18, %v207_v13  ;;  %v359_v32 = vmul.f32 -0.5, %v358_v19  ;;  %v310_v30 = vmul.f32 %v446_v12, %v305_v33 }
  0xc4   :  { %v259_v29 = vadd.f32 %v258_v26, %v233_v22  ;;  %v360_v14 = vmul.f32 1.442695, %v359_v32  ;;  %v448_v35 = vpop.eup %447 }
  0xc5   :  { %v336_v43 = vmul.f32 %v448_v35, %v331_v37 }
  0xc6   :  { %v285_v34 = vadd.f32 %v284_v31, %v259_v29  ;;  %449 = vpow2.f32 %v360_v14 }
  0xc8   :  { %v311_v38 = vadd.f32 %v310_v30, %v285_v34 }
  0xca   :  { %v337_v44 = vadd.f32 %v336_v43, %v311_v38 }
  0xcc   :  { %v450_v36 = vpop.eup %449 }
  0xcd   :  { %v362_v15 = vmul.f32 %v450_v36, %v357_v23 }
  0xcf   :  { %v363_v16 = vadd.f32 %v362_v15, %v337_v44 }
  0xd1   :  { %365 = vst.msk [vmem:[#allocation13] sm:$0x3] %vm364_vm9, %v363_v16 }
  0xd2   :  { %376 = dma.vmem_to_hbm [thread:$0]  %s372_s5, 32, %s374_s25, [#allocation4]  }
  0xd3   :  { %627 = dma.done.wait [#allocation4], 32  }
  0xd4   :  { %628 = vsyncadd [#allocation4], 4294967264 }
  0xd5   :  { %381 = vsyncpa [#allocation3], 1 }
  0xd6   :  { %382 = vsyncpa [#allocation6], 1 }
  0xd7   :  { %383 = vsyncpa [#allocation9], 1 }
  0xd8   :  { %384 = vsyncpa [#allocation12], 1 }
  0xd9   :  { %385 = vsyncpa [#allocation4], 1 }

</bundles_post_ra>
